<compile_context>
chip_gen: v5e
topology: v5e:2x2
jax: 0.10.0
libtpu: 0.0.40
codegen_flags: <defaults>
</compile_context>

<pallas_src>
import jax
import jax.numpy as jnp
from jax.experimental import pallas as pl
from jax.experimental.pallas import tpu as pltpu

_AGG_TARGET_BYTES = 4 << 20   # per pipelined feature block (elementwise, mem-bound)
_MLP_TARGET_BYTES = 2 << 20   # per pipelined feature block (leaves room for f32 activations)


def _round_up(x, m):
    return (x + m - 1) // m * m


def _sublane(dtype):
    # sub-32-bit dtypes pack along sublanes: (8,128)/(16,128)/(32,128) native tiles.
    return {4: 8, 2: 16, 1: 32}.get(jnp.dtype(dtype).itemsize, 8)


def _row_tiling(nrows, row_bytes, dtype, target_bytes):
    """Pick a row-tile size targeting `target_bytes` per block. Returns (tile, padded_rows)."""
    sl = _sublane(dtype)
    tile = int(max(target_bytes // max(int(row_bytes), 1), sl))
    if tile >= nrows:
        return nrows, nrows                      # single full-extent block, no padding
    tile = _round_up(tile, sl)
    if tile >= nrows:
        return nrows, nrows
    return tile, _round_up(nrows, tile)


def _vmem_limit_bytes(need):
    """Clamp the requested scoped-VMEM limit to 3/4 of physical per-core VMEM."""
    try:
        info = pltpu.get_tpu_info()
        phys = int(getattr(info, "vmem_capacity_bytes", 64 * 1024 * 1024))
    except Exception:
        phys = 64 * 1024 * 1024                  # conservative (v7x per-TC)
    cap = (phys * 3) // 4
    return int(min(max(int(need), 32 * 1024 * 1024), cap))


# ---------------------------------------------------------------------------
# Aggregation kernels: grid over row tiles, per-view scale scalars from SMEM.
# ---------------------------------------------------------------------------
def _agg_cat_kernel(thr_ref, feat_ref, out_ref):
    # feat_ref: (V, TB, H) tile; thr_ref: (1, V) f32 SMEM; out_ref: (TB, V*H).
    # Per-view slice stores (no concatenate -> no whole-wide-tile value / vreg pressure).
    V, _, H = feat_ref.shape
    for v in range(V):                           # V small & static -> unrolled
        out_ref[:, v * H:(v + 1) * H] = (feat_ref[v] * thr_ref[0, v]).astype(out_ref.dtype)


def _agg_add_kernel(thr_ref, feat_ref, out_ref):
    # feat_ref: (V, TR, C) lane-dense tile; out_ref: (TR, C).  Accumulate in f32.
    V = feat_ref.shape[0]
    acc = feat_ref[0].astype(jnp.float32) * thr_ref[0, 0]
    for v in range(1, V):
        acc = acc + feat_ref[v].astype(jnp.float32) * thr_ref[0, v]
    out_ref[...] = acc.astype(out_ref.dtype)


def _aggregate_cat(features, thr, target_bytes=_AGG_TARGET_BYTES):
    V, B, H = features.shape
    dtype = features.dtype
    itemsize = jnp.dtype(dtype).itemsize

    row_bytes = 2 * V * H * itemsize                     # feature row in + cat row out
    TB, B_pad = _row_tiling(B, row_bytes, dtype, target_bytes)
    feats = features
    if B_pad != B:                                       # tail only; single cheap copy
        feats = jnp.pad(feats, ((0, 0), (0, B_pad - B), (0, 0)))
    grid = (B_pad // TB,)
    thr2d = thr.reshape(1, V).astype(jnp.float32)

    need = 2 * (V * TB * H * itemsize + TB * V * H * itemsize) + (1 << 20)
    out = pl.pallas_call(
        _agg_cat_kernel,
        out_shape=jax.ShapeDtypeStruct((B_pad, V * H), dtype),
        grid=grid,
        in_specs=[
            pl.BlockSpec((1, V), lambda i: (0, 0),
                         memory_space=pltpu.MemorySpace.SMEM),
            pl.BlockSpec((V, TB, H), lambda i: (0, i, 0)),
        ],
        out_specs=pl.BlockSpec((TB, V * H), lambda i: (i, 0)),
        compiler_params=pltpu.CompilerParams(
            dimension_semantics=("parallel",),
            vmem_limit_bytes=_vmem_limit_bytes(need)),
        cost_estimate=pl.CostEstimate(
            flops=int(V * B_pad * H), transcendentals=0,
            bytes_accessed=int(2 * V * B_pad * H * itemsize)),
    )(thr2d, feats)
    return out[:B] if B_pad != B else out


def _aggregate_add(features, thr, target_bytes=_AGG_TARGET_BYTES):
    V, B, H = features.shape
    dtype = features.dtype
    itemsize = jnp.dtype(dtype).itemsize
    total = B * H

    # Lane-dense relayout: (V, B, H) -> (V, B*H/128, 128) is a free contiguous reshape,
    # giving full 128-lane vregs and unmasked stores even when H < 128.
    if total % 128 == 0:
        R, C = total // 128, 128
    else:
        R, C = B, H                                      # fallback (still correct)
    featsR = features.reshape(V, R, C)

    row_bytes = (V + 1) * C * itemsize                   # V feature rows in + 1 row out
    TR, R_pad = _row_tiling(R, row_bytes, dtype, target_bytes)
    if R_pad != R:
        featsR = jnp.pad(featsR, ((0, 0), (0, R_pad - R), (0, 0)))
    grid = (R_pad // TR,)
    thr2d = thr.reshape(1, V).astype(jnp.float32)

    need = 2 * (V + 1) * TR * C * itemsize + (1 << 20)
    out = pl.pallas_call(
        _agg_add_kernel,
        out_shape=jax.ShapeDtypeStruct((R_pad, C), dtype),
        grid=grid,
        in_specs=[
            pl.BlockSpec((1, V), lambda i: (0, 0),
                         memory_space=pltpu.MemorySpace.SMEM),
            pl.BlockSpec((V, TR, C), lambda i: (0, i, 0)),
        ],
        out_specs=pl.BlockSpec((TR, C), lambda i: (i, 0)),
        compiler_params=pltpu.CompilerParams(
            dimension_semantics=("parallel",),
            vmem_limit_bytes=_vmem_limit_bytes(need)),
        cost_estimate=pl.CostEstimate(
            flops=int(2 * V * R_pad * C), transcendentals=0,
            bytes_accessed=int((V + 1) * R_pad * C * itemsize)),
    )(thr2d, featsR)
    if R_pad != R:
        out = out[:R]
    return out.reshape(B, H)


# ---------------------------------------------------------------------------
# Fused aggregation + MLP kernel for the *_mlp paths:
#   (thr * features) cat -> Linear -> BatchNorm1d (folded) -> ReLU -> (Dropout=id) -> Linear
# expressed as sum_v dot(feat[v], w1'[v*H:(v+1)*H, :]) so the concatenated (B, V*H)
# activation never touches HBM.  Matmuls in bf16 with f32 accumulation.
# ---------------------------------------------------------------------------
def _fused_mlp_kernel(feat_ref, w1_ref, b1_ref, w2_ref, b2_ref, out_ref):
    V, _, H = feat_ref.shape
    acc = jnp.dot(feat_ref[0].astype(jnp.bfloat16), w1_ref[0:H, :],
                  preferred_element_type=jnp.float32)
    for v in range(1, V):
        acc = acc + jnp.dot(feat_ref[v].astype(jnp.bfloat16),
                            w1_ref[v * H:(v + 1) * H, :],
                            preferred_element_type=jnp.float32)
    h = jnp.maximum(acc + b1_ref[...], 0.0)          # Linear1 + folded BN affine + ReLU
    # Dropout(p=0.5) is the identity in eval mode.
    # TODO(synk): training-mode batch-statistic BatchNorm and stochastic Dropout not implemented.
    y = jnp.dot(h.astype(jnp.bfloat16), w2_ref[...],
                preferred_element_type=jnp.float32) + b2_ref[...]
    out_ref[...] = y.astype(out_ref.dtype)


def _fused_agg_mlp(features, thr, p, target_bytes=_MLP_TARGET_BYTES):
    V, B, H = features.shape
    D = V * H
    dtype = features.dtype
    itemsize = jnp.dtype(dtype).itemsize
    assert p['w1'].shape == (D, D)
    O = p['w2'].shape[1]
    O_pad = max(_round_up(O, 128), 128)              # lane-dense output writeback

    # Hoist + fold all loop-invariant affine terms wrapper-side:
    # per-view thresholds -> row blocks of w1; eval-mode BatchNorm -> columns of w1 / b1.
    inv_std = jax.lax.rsqrt(p['var'].astype(jnp.float32) + 1e-5)
    scale = p['gamma'].astype(jnp.float32) * inv_std                     # (D,)
    shift = p['beta'].astype(jnp.float32) - p['mean'].astype(jnp.float32) * scale
    thr_rows = jnp.repeat(thr.astype(jnp.float32), H)                    # (D,)
    w1 = (p['w1'].astype(jnp.float32) * thr_rows[:, None] * scale[None, :]).astype(jnp.bfloat16)
    b1 = (p['b1'].astype(jnp.float32) * scale + shift).reshape(1, D)
    w2 = p['w2'].astype(jnp.float32)
    b2 = p['b2'].astype(jnp.float32).reshape(1, O)
    if O_pad != O:
        w2 = jnp.pad(w2, ((0, 0), (0, O_pad - O)))
        b2 = jnp.pad(b2, ((0, 0), (0, O_pad - O)))
    w2 = w2.astype(jnp.bfloat16)

    # Row tile: feature tile + f32 hidden activation + padded output row per batch row.
    row_bytes = V * H * itemsize + D * 4 + O_pad * 4
    TB, B_pad = _row_tiling(B, row_bytes, dtype, target_bytes)
    feats = features
    if B_pad != B:
        feats = jnp.pad(feats, ((0, 0), (0, B_pad - B), (0, 0)))
    grid = (B_pad // TB,)

    need = (2 * (V * TB * H * itemsize + TB * O_pad * itemsize)   # pipelined feature/out blocks
            + 2 * (D * D + D * O_pad) * 2                          # bf16 weights (worst-case 2 bufs)
            + 2 * (D + O_pad) * 4                                  # biases
            + TB * D * 4 + (2 << 20))                              # in-kernel f32 activation + margin
    out = pl.pallas_call(
        _fused_mlp_kernel,
        out_shape=jax.ShapeDtypeStruct((B_pad, O_pad), dtype),
        grid=grid,
        in_specs=[
            pl.BlockSpec((V, TB, H), lambda i: (0, i, 0)),
            pl.BlockSpec((D, D), lambda i: (0, 0)),
            pl.BlockSpec((1, D), lambda i: (0, 0)),
            pl.BlockSpec((D, O_pad), lambda i: (0, 0)),
            pl.BlockSpec((1, O_pad), lambda i: (0, 0)),
        ],
        out_specs=pl.BlockSpec((TB, O_pad), lambda i: (i, 0)),
        compiler_params=pltpu.CompilerParams(
            dimension_semantics=("parallel",),
            vmem_limit_bytes=_vmem_limit_bytes(need)),
        cost_estimate=pl.CostEstimate(
            flops=int(2 * B_pad * D * (D + O_pad)), transcendentals=0,
            bytes_accessed=int((V * B_pad * H + B_pad * O_pad) * itemsize
                               + (D * D + D * O_pad) * 2)),
    )(feats, w1, b1, w2, b2)
    if B_pad != B:
        out = out[:B]
    if O_pad != O:
        out = out[:, :O]
    return out


# ---------------------------------------------------------------------------
# Public forward matching Inter_AGG.forward (inference mode).
# ---------------------------------------------------------------------------
def inter_agg_forward(features, thresholds, inter_opt, mlp_params=None):
    """features: (V, B, H); thresholds: (V,) or (V, 1).

    mlp_params (for *_mlp options): dict with
      w1 (D, D), b1 (D,), gamma/beta/mean/var (D,), w2 (D, O), b2 (O,)
    where D is the concatenated dim (V*H) and Linear weights are stored (in, out).
    """
    V, B, H = features.shape
    thr = jnp.asarray(thresholds, jnp.float32).reshape(-1)
    assert thr.shape[0] == V

    if inter_opt in ('cat_wo_avg', 'add_wo_avg'):
        thr = jnp.ones((V,), jnp.float32)        # no per-view weighting on these paths
    elif inter_opt not in ('cat_w_avg', 'cat_w_avg_mlp', 'cat_wo_avg_mlp', 'add_w_avg'):
        raise ValueError(f"unknown inter_opt: {inter_opt}")

    if inter_opt in ('cat_w_avg_mlp', 'cat_wo_avg_mlp'):
        # NOTE: the PyTorch source multiplies by thresholds on 'cat_wo_avg_mlp' too.
        return _fused_agg_mlp(features, thr, mlp_params)
    if inter_opt.startswith('cat'):
        return _aggregate_cat(features, thr)
    return _aggregate_add(features, thr)


if __name__ == "__main__":
    key = jax.random.PRNGKey(0)
    kf, kt, kw1, kb1, kw2, kb2 = jax.random.split(key, 6)

    V, B, H = 3, 8, 32              # views, batch (nodes), hidden
    hid_dim = V * H                 # concatenated dim fed to the MLP
    out_dim = 16

    features = jax.random.normal(kf, (V, B, H), jnp.float32)
    thresholds = jax.random.uniform(kt, (V, 1), jnp.float32)

    w1 = jax.random.normal(kw1, (hid_dim, hid_dim), jnp.float32) * 0.05
    b1 = jax.random.normal(kb1, (hid_dim,), jnp.float32) * 0.05
    gamma = jnp.ones((hid_dim,), jnp.float32)
    beta = jnp.zeros((hid_dim,), jnp.float32)
    run_mean = jnp.zeros((hid_dim,), jnp.float32)
    run_var = jnp.ones((hid_dim,), jnp.float32)
    w2 = jax.random.normal(kw2, (hid_dim, out_dim), jnp.float32) * 0.05
    b2 = jax.random.normal(kb2, (out_dim,), jnp.float32) * 0.05
    mlp_params = dict(w1=w1, b1=b1, gamma=gamma, beta=beta,
                      mean=run_mean, var=run_var, w2=w2, b2=b2)

    # Pure-JAX reference (matches PyTorch eval-mode forward).
    feat_bvh = jnp.transpose(features, (1, 0, 2))            # (B, V, H)
    thr_b = thresholds.reshape(1, V, 1)

    def ref_mlp(x):
        h = x @ w1 + b1
        h = (h - run_mean) / jnp.sqrt(run_var + 1e-5) * gamma + beta
        h = jnp.maximum(h, 0.0)
        return h @ w2 + b2

    refs = {
        'cat_wo_avg':      (feat_bvh.reshape(B, -1),                       1e-5),
        'cat_w_avg':       ((feat_bvh * thr_b).reshape(B, -1),             1e-5),
        'cat_w_avg_mlp':   (ref_mlp((feat_bvh * thr_b).reshape(B, -1)),    3e-2),  # bf16 MXU path
        'cat_wo_avg_mlp':  (ref_mlp((feat_bvh * thr_b).reshape(B, -1)),    3e-2),  # bf16 MXU path
        'add_wo_avg':      (feat_bvh.sum(axis=1),                          1e-5),
        'add_w_avg':       ((feat_bvh * thr_b).sum(axis=1),                1e-5),
    }

    ok = True
    for opt, (ref, tol) in refs.items():
        out = inter_agg_forward(features, thresholds, opt, mlp_params=mlp_params)
        out = jax.block_until_ready(out)
        if out.shape != ref.shape or not jnp.allclose(out, ref, atol=tol, rtol=tol):
            ok = False
            err = float(jnp.max(jnp.abs(out - ref))) if out.shape == ref.shape else float('nan')
            print(f"MISMATCH for {opt}: shape {out.shape} vs {ref.shape}, max abs err {err:.3e}")

    assert ok, "Inter_AGG Pallas kernel mismatch vs reference"
    print("KERNEL_OK")
</pallas_src>

<mosaic_0001>
module attributes {stable_mosaic.version = 11 : i64} {
  func.func @_agg_cat_kernel(%arg0: i32, %arg1: memref<1x3xf32, #tpu.memory_space<smem>>, %arg2: memref<3x8x32xf32, #tpu.memory_space<vmem>>, %arg3: memref<8x96xf32, #tpu.memory_space<vmem>>) attributes {dimension_semantics = [#tpu.dimension_semantics<parallel>], iteration_bounds = array<i64: 1>, scalar_prefetch = 0 : i64, scratch_operands = 0 : i64, tpu.core_type = #tpu.core_type<tc>, window_params = [{transform_indices = @transform_0, window_bounds = array<i64: 1, 3>}, {transform_indices = @transform_1, window_bounds = array<i64: 3, 8, 32>}, {transform_indices = @transform_2, window_bounds = array<i64: 8, 96>}]} {
    %c0 = arith.constant 0 : index
    %c0_0 = arith.constant 0 : index
    %c0_1 = arith.constant 0 : index
    %0 = vector.load %arg2[%c0, %c0_0, %c0_1] : memref<3x8x32xf32, #tpu.memory_space<vmem>>, vector<1x8x32xf32>
    %1 = vector.shape_cast %0 : vector<1x8x32xf32> to vector<8x32xf32>
    %c0_2 = arith.constant 0 : index
    %c0_3 = arith.constant 0 : index
    %2 = memref.load %arg1[%c0_2, %c0_3] : memref<1x3xf32, #tpu.memory_space<smem>>
    %3 = vector.broadcast %2 : f32 to vector<8x32xf32>
    %4 = arith.mulf %1, %3 : vector<8x32xf32>
    %c0_4 = arith.constant 0 : index
    %c0_5 = arith.constant 0 : index
    %5 = vector.load %arg3[%c0_4, %c0_5] : memref<8x96xf32, #tpu.memory_space<vmem>>, vector<8x32xf32>
    tpu.vector_store %arg3[%c0_4, %c0_5], %4 {strides = array<i32>} : memref<8x96xf32, #tpu.memory_space<vmem>>, vector<8x32xf32>,
    %c1 = arith.constant 1 : index
    %c0_6 = arith.constant 0 : index
    %c0_7 = arith.constant 0 : index
    %6 = vector.load %arg2[%c1, %c0_6, %c0_7] : memref<3x8x32xf32, #tpu.memory_space<vmem>>, vector<1x8x32xf32>
    %7 = vector.shape_cast %6 : vector<1x8x32xf32> to vector<8x32xf32>
    %c0_8 = arith.constant 0 : index
    %c1_9 = arith.constant 1 : index
    %8 = memref.load %arg1[%c0_8, %c1_9] : memref<1x3xf32, #tpu.memory_space<smem>>
    %9 = vector.broadcast %8 : f32 to vector<8x32xf32>
    %10 = arith.mulf %7, %9 : vector<8x32xf32>
    %c0_10 = arith.constant 0 : index
    %c32 = arith.constant 32 : index
    %11 = vector.load %arg3[%c0_10, %c32] : memref<8x96xf32, #tpu.memory_space<vmem>>, vector<8x32xf32>
    tpu.vector_store %arg3[%c0_10, %c32], %10 {strides = array<i32>} : memref<8x96xf32, #tpu.memory_space<vmem>>, vector<8x32xf32>,
    %c2 = arith.constant 2 : index
    %c0_11 = arith.constant 0 : index
    %c0_12 = arith.constant 0 : index
    %12 = vector.load %arg2[%c2, %c0_11, %c0_12] : memref<3x8x32xf32, #tpu.memory_space<vmem>>, vector<1x8x32xf32>
    %13 = vector.shape_cast %12 : vector<1x8x32xf32> to vector<8x32xf32>
    %c0_13 = arith.constant 0 : index
    %c2_14 = arith.constant 2 : index
    %14 = memref.load %arg1[%c0_13, %c2_14] : memref<1x3xf32, #tpu.memory_space<smem>>
    %15 = vector.broadcast %14 : f32 to vector<8x32xf32>
    %16 = arith.mulf %13, %15 : vector<8x32xf32>
    %c0_15 = arith.constant 0 : index
    %c64 = arith.constant 64 : index
    %17 = vector.load %arg3[%c0_15, %c64] : memref<8x96xf32, #tpu.memory_space<vmem>>, vector<8x32xf32>
    tpu.vector_store %arg3[%c0_15, %c64], %16 {strides = array<i32>} : memref<8x96xf32, #tpu.memory_space<vmem>>, vector<8x32xf32>,
    return
  }
  func.func @transform_0(%arg0: i32) -> (i32, i32) {
    %c0_i32 = arith.constant 0 : i32
    %c0_i32_0 = arith.constant 0 : i32
    %c0_i32_1 = arith.constant 0 : i32
    return %c0_i32, %c0_i32_0 : i32, i32
  }
  func.func @transform_1(%arg0: i32) -> (i32, i32, i32) {
    %c0_i32 = arith.constant 0 : i32
    %c0_i32_0 = arith.constant 0 : i32
    %c0_i32_1 = arith.constant 0 : i32
    return %c0_i32, %arg0, %c0_i32_0 : i32, i32, i32
  }
  func.func @transform_2(%arg0: i32) -> (i32, i32) {
    %c0_i32 = arith.constant 0 : i32
    %c0_i32_0 = arith.constant 0 : i32
    return %arg0, %c0_i32 : i32, i32
  }
}

</mosaic_0001>

<bundles_post_ra>
// kernel: tpu_custom_call.1
= control target key start
LH: loop header
LB: loop body
LE: loop exit
PB: predicated region body
PF: predicated region fallthrough
CT: control target
= control target key end

     0   :  { %7 = vsyncpa [#allocation5], 0  ;;  %s193_s0 = inlined_call_operand.hbm [shape: f32[1,3], index: 0, kind: input, shape index: {}]   ;;  %s194_s1 = inlined_call_operand.hbm [shape: f32[3,8,32], index: 1, kind: input, shape index: {}]   ;;  %s195_s2 = inlined_call_operand.hbm [shape: f32[8,96], index: 2, kind: output, shape index: {}]  }
   0x1   :  { %8 = vsyncpa [#allocation3], 0 }
   0x2   :  { %9 = vsyncpa [#allocation4], 0  ;;  %s15_s11 = sshll.u32 %s193_s0, 4  ;;  %s23_s14 = sshll.u32 %s194_s1, 4  ;;  %s16_s11 = int_to_ptr.hbm [resolvable:$true] %s15_s11  ;;  %s24_s14 = int_to_ptr.hbm [resolvable:$true] %s23_s14 }
   0x3   :  { %s162_s15 = smov [#allocation2]   ;;  %s163_s16 = smov [#allocation6]  }
   0x4   :  { %18 = dma.hbm_to_smem %s16_s11, 16, %s162_s15, [#allocation5]  }
   0x5   :  { %s25_s17 = sshll.u32 %s163_s16, 4  ;;  %s164_s18 = smov 128   ;;  %s26_s17 = int_to_ptr.vmem [resolvable:$true] %s25_s17 }
   0x6   :  { %s165_s19 = smov 8  }
   0x7   :  { %31 = dma.hbm_to_vmem [thread:$0]  %s24_s14, 384, %s26_s17, [#allocation3], %s164_s18, %s164_s18, %s165_s19  }
   0x8   :  { %156 = dma.done.wait [#allocation5], 16  }
   0x9   :  { %157 = vsyncadd [#allocation5], 4294967280 }
   0xa   :  { %158 = dma.done.wait [#allocation3], 384  }
   0xb   :  { %159 = vsyncadd [#allocation3], 4294966912 }
   0xc   :  { %40 = sfence }
   0xd   :  { %s87_s0 = sld [smem:[#allocation2 + $0x1]]  ;;  %v48_v0 = vld [vmem:[#allocation6 + $0x8] sm:$0xff]  ;;  %s166_s1 = smov 32   ;;  %v59_v3 = vld [vmem:[#allocation6 + $0x10] sm:$0xff]  ;;  %v41_v6 = vld [vmem:[#allocation6] sm:$0xff]  ;;  %vm45_vm0 = vcmask 261120  }
   0xe   :  { %s88_s20 = sld [smem:[#allocation2 + $0x2]]  ;;  %s167_s21 = smov 64   ;;  %vm56_vm1 = vcmask 523520   ;;  %vm67_vm2 = vcmask 785920  }
   0xf   :  { %s42_s22 = sld [smem:[#allocation2]]  ;;  %s168_s23 = smov [#allocation7]  }
  0x10   :  { %s74_s24 = sshll.u32 %s168_s23, 4  ;;  %s76_s27 = sshll.u32 %s195_s2, 4  ;;  %s75_s24 = int_to_ptr.vmem [resolvable:$true] %s74_s24  ;;  %s77_s27 = int_to_ptr.hbm [resolvable:$true] %s76_s27 }
  0x13   :  { %v50_v1 = vstv %s87_s0 }
  0x14   :  { %v51_v2 = vmul.f32 %v50_v1, %v48_v0  ;;  %v61_v4 = vstv %s88_s20 }
  0x15   :  { %v62_v5 = vmul.f32 %v61_v4, %v59_v3  ;;  %v43_v7 = vstv %s42_s22 }
  0x16   :  { %53 = vrot.lane.b32.xlu0 %v51_v2, %s166_s1  ;;  %v44_v8 = vmul.f32 %v43_v7, %v41_v6 }
  0x18   :  { %46 = vst.msk [vmem:[#allocation7] sm:$0xff] %vm45_vm0, %v44_v8 }
  0x1e   :  { %64 = vrot.lane.b32.xlu0 %v62_v5, %s167_s21 }
  0x88   :  { %v54_v9 = vpop.permute.xlu0 %53 }
  0x89   :  { %57 = vst.msk [vmem:[#allocation7] sm:$0xff] %vm56_vm1, %v54_v9 }
  0x90   :  { %v65_v10 = vpop.permute.xlu0 %64 }
  0x91   :  { %68 = vst.msk [vmem:[#allocation7] sm:$0xff] %vm67_vm2, %v65_v10 }
  0x92   :  { %79 = dma.vmem_to_hbm [thread:$0]  %s75_s24, 128, %s77_s27, [#allocation4]  }
  0x93   :  { %160 = dma.done.wait [#allocation4], 128  }
  0x94   :  { %161 = vsyncadd [#allocation4], 4294967168 }
  0x95   :  { %84 = vsyncpa [#allocation3], 1 }
  0x96   :  { %85 = vsyncpa [#allocation4], 1 }
  0x97   :  { %86 = vsyncpa [#allocation5], 1 }

</bundles_post_ra>
